<compile_context>
chip_gen: v6e
topology: v6e:2x2x1
jax: 0.10.0
libtpu: 0.0.40
codegen_flags: <defaults>
</compile_context>

<pallas_src>
import functools

import jax
import jax.numpy as jnp
from jax.experimental import pallas as pl
from jax.experimental.pallas import tpu as pltpu


def _round_up(x, m):
    return (x + m - 1) // m * m


# ----------------------------------------------------------------------------
# Fused decoder kernel: all LSTM layers (both directions) + output Linear.
# ----------------------------------------------------------------------------
def _make_decoder_kernel(n_layers, hid_dim, din0_pad):
    H = hid_dim
    G = 2 * H                       # fused gate block width (fwd||bwd) = 128
    d_in = [din0_pad] + [G] * (n_layers - 1)   # x-slot width per layer

    def kernel(*refs):
        x_ref, h0_ref, c0_ref = refs[0], refs[1], refs[2]
        wb = refs[3:3 + 2 * n_layers]            # (W_l, b_l) per layer
        wout_ref = refs[3 + 2 * n_layers]        # (2H, out_dim) bf16
        bout_ref = refs[4 + 2 * n_layers]        # (1, out_dim) f32
        pred_ref = refs[5 + 2 * n_layers]
        hN_ref = refs[6 + 2 * n_layers]
        cN_ref = refs[7 + 2 * n_layers]
        xh_ref = refs[8 + 2 * n_layers]          # (B_pad, W_s) bf16 scratch

        # Stage the (already lane-padded) layer-0 input into the fused operand.
        xh_ref[:, :d_in[0]] = x_ref[...].astype(jnp.bfloat16)

        for layer in range(n_layers):            # static unroll; n_layers small
            dl = d_in[layer]
            w_ref = wb[2 * layer]                # (dl + 2H, 8H) bf16
            b_ref = wb[2 * layer + 1]            # (1, 8H) f32 = b_ih + b_hh

            # Stage fwd / bwd hidden state right after the x slot (PyTorch
            # state layout is read directly — no wrapper transpose needed).
            xh_ref[:, dl:dl + H] = h0_ref[2 * layer].astype(jnp.bfloat16)
            xh_ref[:, dl + H:dl + 2 * H] = h0_ref[2 * layer + 1].astype(jnp.bfloat16)

            # ONE fused MXU matmul per layer: (B, dl+2H) @ (dl+2H, 8H) -> f32.
            gates = jnp.dot(xh_ref[:, :dl + 2 * H], w_ref[...],
                            preferred_element_type=jnp.float32) + b_ref[...]

            # Gate blocks, each 2H = 128 lanes wide: [fwd H | bwd H].
            i = jax.nn.sigmoid(gates[:, 0 * G:1 * G])
            f = jax.nn.sigmoid(gates[:, 1 * G:2 * G])
            g = jnp.tanh(gates[:, 2 * G:3 * G])
            o = jax.nn.sigmoid(gates[:, 3 * G:4 * G])

            for d in range(2):                   # 0 = forward, 1 = backward
                sl = slice(d * H, (d + 1) * H)
                c_new = f[:, sl] * c0_ref[2 * layer + d] + i[:, sl] * g[:, sl]
                h_new = o[:, sl] * jnp.tanh(c_new)
                hN_ref[2 * layer + d] = h_new
                cN_ref[2 * layer + d] = c_new
                # h_new is also the next layer's (and the Linear head's) input.
                xh_ref[:, d * H:(d + 1) * H] = h_new.astype(jnp.bfloat16)

        # Output head: (B, 2H) @ (2H, out_dim) + b.
        pred_ref[...] = (
            jnp.dot(xh_ref[:, :G], wout_ref[...],
                    preferred_element_type=jnp.float32) + bout_ref[...])

    return kernel


# ----------------------------------------------------------------------------
# One-time weight packing (PyTorch layout -> fused kernel layout).
# ----------------------------------------------------------------------------
def _pack_layer(layer_params, H, din, din_pad):
    """layer_params: [(w_ih, w_hh, b_ih, b_hh) fwd, (same) bwd] (PyTorch shapes).

    Returns:
      W : (din_pad + 2H, 8H) bf16 — rows [x (din_pad, zero-padded) | h_fwd | h_bwd],
          columns [i_f,i_b | f_f,f_b | g_f,g_b | o_f,o_b] (each slice H wide).
      b : (1, 8H) f32 — b_ih + b_hh in the same column order.
    """
    W = jnp.zeros((din_pad + 2 * H, 8 * H), jnp.float32)
    b = jnp.zeros((1, 8 * H), jnp.float32)
    for q in range(4):          # i, f, g, o
        for d in range(2):      # forward, backward
            w_ih, w_hh, b_ih, b_hh = layer_params[d]
            col0 = q * 2 * H + d * H
            W = W.at[:din, col0:col0 + H].set(w_ih[q * H:(q + 1) * H, :].T)
            row0 = din_pad + d * H
            W = W.at[row0:row0 + H, col0:col0 + H].set(w_hh[q * H:(q + 1) * H, :].T)
            b = b.at[0, col0:col0 + H].set(
                b_ih[q * H:(q + 1) * H] + b_hh[q * H:(q + 1) * H])
    return W.astype(jnp.bfloat16), b


def pack_decoder_params(params, input_dim, hid_dim, n_layers):
    H = hid_dim
    din0_pad = _round_up(max(input_dim, 1), 128)   # lane-pad layer-0 input
    layers = []
    for layer in range(n_layers):
        din = input_dim if layer == 0 else 2 * H
        dpad = din0_pad if layer == 0 else 2 * H
        layers.append(_pack_layer(params["lstm"][layer], H, din, dpad))
    return {
        "layers": layers,
        "w_out_t": params["w_out"].T.astype(jnp.bfloat16),          # (2H, out)
        "b_out": params["b_out"].reshape(1, -1).astype(jnp.float32),
    }


# ----------------------------------------------------------------------------
# Decoder forward (single fused pallas_call).
# ----------------------------------------------------------------------------
@functools.partial(jax.jit, static_argnames=("n_layers", "hid_dim", "input_dim"))
def decoder_forward(packed, x, hidden, cell, n_layers, hid_dim, input_dim):
    """x: (B, input_dim); hidden/cell: (n_layers*2, B, hid_dim), PyTorch layout.

    Returns (prediction (B, output_dim), hidden, cell), matching the module.
    """
    H = hid_dim
    B = x.shape[0]
    B_pad = _round_up(B, 8)                        # f32 sublane tile
    din0_pad = packed["layers"][0][0].shape[0] - 2 * H
    out_dim = packed["w_out_t"].shape[1]

    # Pad batch to a sublane multiple (and lane-pad the layer-0 input).
    x_p = jnp.pad(x.astype(jnp.float32),
                  ((0, B_pad - B), (0, din0_pad - input_dim)))
    h_p = jnp.pad(hidden.astype(jnp.float32), ((0, 0), (0, B_pad - B), (0, 0)))
    c_p = jnp.pad(cell.astype(jnp.float32), ((0, 0), (0, B_pad - B), (0, 0)))

    weight_args = []
    for (W, b) in packed["layers"]:
        weight_args += [W, b]

    n_in = 3 + 2 * n_layers + 2
    scratch_w = max(din0_pad, 2 * H) + 2 * H
    kernel = _make_decoder_kernel(n_layers, H, din0_pad)

    pred, hN, cN = pl.pallas_call(
        kernel,
        out_shape=(
            jax.ShapeDtypeStruct((B_pad, out_dim), jnp.float32),
            jax.ShapeDtypeStruct((2 * n_layers, B_pad, H), jnp.float32),
            jax.ShapeDtypeStruct((2 * n_layers, B_pad, H), jnp.float32),
        ),
        # No grid: the whole decoder step (a few hundred KiB) lives in VMEM.
        in_specs=[pl.BlockSpec(memory_space=pltpu.MemorySpace.VMEM)] * n_in,
        out_specs=(
            pl.BlockSpec(memory_space=pltpu.MemorySpace.VMEM),
            pl.BlockSpec(memory_space=pltpu.MemorySpace.VMEM),
            pl.BlockSpec(memory_space=pltpu.MemorySpace.VMEM),
        ),
        scratch_shapes=[pltpu.VMEM((B_pad, scratch_w), jnp.bfloat16)],
        # P8: update the state buffers in place (hidden->hN, cell->cN).
        input_output_aliases={1: 1, 2: 2},
    )(x_p, h_p, c_p, *weight_args, packed["w_out_t"], packed["b_out"])

    return pred[:B], hN[:, :B], cN[:, :B]


# ----------------------------------------------------------------------------
# Parameter init (PyTorch-style layout) + pure-JAX references.
# ----------------------------------------------------------------------------
def init_decoder_params(key, output_dim, input_dim, hid_dim, n_layers):
    H = hid_dim
    layers = []
    for layer in range(n_layers):
        din = input_dim if layer == 0 else 2 * H
        dirs = []
        for _ in range(2):  # forward, backward
            key, k1, k2, k3, k4 = jax.random.split(key, 5)
            w_ih = 0.1 * jax.random.normal(k1, (4 * H, din), jnp.float32)
            w_hh = 0.1 * jax.random.normal(k2, (4 * H, H), jnp.float32)
            b_ih = 0.1 * jax.random.normal(k3, (4 * H,), jnp.float32)
            b_hh = 0.1 * jax.random.normal(k4, (4 * H,), jnp.float32)
            dirs.append((w_ih, w_hh, b_ih, b_hh))
        layers.append(dirs)
    key, k1, k2 = jax.random.split(key, 3)
    w_out = 0.1 * jax.random.normal(k1, (output_dim, 2 * H), jnp.float32)
    b_out = 0.1 * jax.random.normal(k2, (output_dim,), jnp.float32)
    return {"lstm": layers, "w_out": w_out, "b_out": b_out}


def _ref_decoder(params, x, hidden, cell, n_layers, hid_dim,
                 weights_dtype=jnp.float32):
    """PyTorch-LSTM-semantics reference. weights_dtype=bf16 mimics the kernel's
    bf16-weight / f32-accumulate matmuls exactly (for tight validation)."""
    H = hid_dim
    cast = lambda a: a.astype(weights_dtype)
    out = x.astype(jnp.float32)
    h_new, c_new = [], []
    for layer in range(n_layers):
        outs = []
        for d in range(2):
            w_ih, w_hh, b_ih, b_hh = params["lstm"][layer][d]
            h0 = hidden[2 * layer + d]
            c0 = cell[2 * layer + d]
            gates = (
                jnp.dot(cast(out), cast(w_ih).T, preferred_element_type=jnp.float32)
                + jnp.dot(cast(h0), cast(w_hh).T, preferred_element_type=jnp.float32)
                + b_ih + b_hh)
            i = jax.nn.sigmoid(gates[:, 0:H])
            f = jax.nn.sigmoid(gates[:, H:2 * H])
            g = jnp.tanh(gates[:, 2 * H:3 * H])
            o = jax.nn.sigmoid(gates[:, 3 * H:4 * H])
            c_n = f * c0 + i * g
            h_n = o * jnp.tanh(c_n)
            outs.append(h_n)
            h_new.append(h_n)
            c_new.append(c_n)
        out = jnp.concatenate(outs, axis=-1)
    pred = (jnp.dot(cast(out), cast(params["w_out"]).T,
                    preferred_element_type=jnp.float32) + params["b_out"])
    return pred, jnp.stack(h_new, 0), jnp.stack(c_new, 0)


if __name__ == "__main__":
    # Small, module-consistent shapes. nn.Linear(128, output_dim) implies
    # 2 * hid_dim == 128, i.e. hid_dim = 64.
    OUTPUT_DIM = 128
    INPUT_DIM = 32
    HID_DIM = 64
    N_LAYERS = 2
    B = 2

    key = jax.random.PRNGKey(0)
    key, pkey, xkey, hkey, ckey = jax.random.split(key, 5)
    params = init_decoder_params(pkey, OUTPUT_DIM, INPUT_DIM, HID_DIM, N_LAYERS)
    x = jax.random.normal(xkey, (B, INPUT_DIM), jnp.float32)
    hidden = 0.1 * jax.random.normal(hkey, (N_LAYERS * 2, B, HID_DIM), jnp.float32)
    cell = 0.1 * jax.random.normal(ckey, (N_LAYERS * 2, B, HID_DIM), jnp.float32)

    packed = pack_decoder_params(params, INPUT_DIM, HID_DIM, N_LAYERS)  # one-time
    pred, h_new, c_new = decoder_forward(
        packed, x, hidden, cell,
        n_layers=N_LAYERS, hid_dim=HID_DIM, input_dim=INPUT_DIM)
    pred = jax.block_until_ready(pred)
    h_new = jax.block_until_ready(h_new)
    c_new = jax.block_until_ready(c_new)

    assert pred.shape == (B, OUTPUT_DIM)
    assert h_new.shape == (N_LAYERS * 2, B, HID_DIM)
    assert c_new.shape == (N_LAYERS * 2, B, HID_DIM)

    # Tight check against a bf16-weight reference (same math as the kernel).
    p_q, h_q, c_q = _ref_decoder(params, x, hidden, cell, N_LAYERS, HID_DIM,
                                 weights_dtype=jnp.bfloat16)
    assert jnp.allclose(pred, p_q, rtol=1e-3, atol=1e-3)
    assert jnp.allclose(h_new, h_q, rtol=1e-3, atol=1e-3)
    assert jnp.allclose(c_new, c_q, rtol=1e-3, atol=1e-3)

    # Coarser semantics check against the pure-f32 PyTorch reference
    # (deviation comes only from bf16 weight storage).
    p_f, h_f, c_f = _ref_decoder(params, x, hidden, cell, N_LAYERS, HID_DIM)
    assert jnp.allclose(pred, p_f, rtol=5e-2, atol=5e-2)
    assert jnp.allclose(h_new, h_f, rtol=5e-2, atol=5e-2)
    assert jnp.allclose(c_new, c_f, rtol=5e-2, atol=5e-2)

    print("KERNEL_OK")
</pallas_src>

<mosaic_0001>
module attributes {stable_mosaic.version = 11 : i64} {
  func.func @kernel(%arg0: memref<8x128xf32, #tpu.memory_space<vmem>>, %arg1: memref<4x8x64xf32, #tpu.memory_space<vmem>>, %arg2: memref<4x8x64xf32, #tpu.memory_space<vmem>>, %arg3: memref<256x512xbf16, #tpu.memory_space<vmem>>, %arg4: memref<1x512xf32, #tpu.memory_space<vmem>>, %arg5: memref<256x512xbf16, #tpu.memory_space<vmem>>, %arg6: memref<1x512xf32, #tpu.memory_space<vmem>>, %arg7: memref<128x128xbf16, #tpu.memory_space<vmem>>, %arg8: memref<1x128xf32, #tpu.memory_space<vmem>>, %arg9: memref<8x128xf32, #tpu.memory_space<vmem>>, %arg10: memref<4x8x64xf32, #tpu.memory_space<vmem>>, %arg11: memref<4x8x64xf32, #tpu.memory_space<vmem>>, %arg12: memref<8x256xbf16, #tpu.memory_space<vmem>>) attributes {dimension_semantics = [], scalar_prefetch = 0 : i64, scratch_operands = 1 : i64, tpu.core_type = #tpu.core_type<tc>} {
    %c0 = arith.constant 0 : index
    %c0_0 = arith.constant 0 : index
    %0 = vector.load %arg0[%c0, %c0_0] : memref<8x128xf32, #tpu.memory_space<vmem>>, vector<8x128xf32>
    %1 = arith.truncf %0 : vector<8x128xf32> to vector<8x128xbf16>
    %c0_1 = arith.constant 0 : index
    %c0_2 = arith.constant 0 : index
    %2 = vector.load %arg12[%c0_1, %c0_2] : memref<8x256xbf16, #tpu.memory_space<vmem>>, vector<8x128xbf16>
    tpu.vector_store %arg12[%c0_1, %c0_2], %1 {strides = array<i32>} : memref<8x256xbf16, #tpu.memory_space<vmem>>, vector<8x128xbf16>,
    %c0_3 = arith.constant 0 : index
    %c0_4 = arith.constant 0 : index
    %c0_5 = arith.constant 0 : index
    %3 = vector.load %arg1[%c0_3, %c0_4, %c0_5] : memref<4x8x64xf32, #tpu.memory_space<vmem>>, vector<1x8x64xf32>
    %4 = vector.shape_cast %3 : vector<1x8x64xf32> to vector<8x64xf32>
    %5 = arith.truncf %4 : vector<8x64xf32> to vector<8x64xbf16>
    %c0_6 = arith.constant 0 : index
    %c128 = arith.constant 128 : index
    %6 = vector.load %arg12[%c0_6, %c128] : memref<8x256xbf16, #tpu.memory_space<vmem>>, vector<8x64xbf16>
    tpu.vector_store %arg12[%c0_6, %c128], %5 {strides = array<i32>} : memref<8x256xbf16, #tpu.memory_space<vmem>>, vector<8x64xbf16>,
    %c1 = arith.constant 1 : index
    %c0_7 = arith.constant 0 : index
    %c0_8 = arith.constant 0 : index
    %7 = vector.load %arg1[%c1, %c0_7, %c0_8] : memref<4x8x64xf32, #tpu.memory_space<vmem>>, vector<1x8x64xf32>
    %8 = vector.shape_cast %7 : vector<1x8x64xf32> to vector<8x64xf32>
    %9 = arith.truncf %8 : vector<8x64xf32> to vector<8x64xbf16>
    %c0_9 = arith.constant 0 : index
    %c192 = arith.constant 192 : index
    %10 = vector.load %arg12[%c0_9, %c192] : memref<8x256xbf16, #tpu.memory_space<vmem>>, vector<8x64xbf16>
    tpu.vector_store %arg12[%c0_9, %c192], %9 {strides = array<i32>} : memref<8x256xbf16, #tpu.memory_space<vmem>>, vector<8x64xbf16>,
    %c0_10 = arith.constant 0 : index
    %c0_11 = arith.constant 0 : index
    %11 = vector.load %arg12[%c0_10, %c0_11] : memref<8x256xbf16, #tpu.memory_space<vmem>>, vector<8x256xbf16>
    %c0_12 = arith.constant 0 : index
    %c0_13 = arith.constant 0 : index
    %12 = vector.load %arg3[%c0_12, %c0_13] : memref<256x512xbf16, #tpu.memory_space<vmem>>, vector<256x512xbf16>
    %cst = arith.constant dense<0.000000e+00> : vector<8x512xf32>
    %13 = tpu.matmul %11, %12, %cst {dimension_numbers = #tpu.dot_dimension_numbers<[1], [0], [0], [1], [0, 0, 1, 1], [], []>} : vector<8x256xbf16>, vector<256x512xbf16>, vector<8x512xf32> -> vector<8x512xf32>
    %c0_14 = arith.constant 0 : index
    %c0_15 = arith.constant 0 : index
    %14 = vector.load %arg4[%c0_14, %c0_15] : memref<1x512xf32, #tpu.memory_space<vmem>>, vector<1x512xf32>
    %15 = vector.broadcast %14 : vector<1x512xf32> to vector<8x512xf32>
    %16 = arith.addf %13, %15 : vector<8x512xf32>
    %17 = vector.extract_strided_slice %16 {offsets = [0, 0], sizes = [8, 128], strides = [1, 1]} : vector<8x512xf32> to vector<8x128xf32>
    %18 = arith.negf %17 : vector<8x128xf32>
    %19 = math.exp %18 : vector<8x128xf32>
    %cst_16 = arith.constant 1.000000e+00 : f32
    %20 = vector.broadcast %cst_16 : f32 to vector<8x128xf32>
    %21 = arith.addf %20, %19 : vector<8x128xf32>
    %22 = arith.divf %20, %21 : vector<8x128xf32>
    %23 = vector.extract_strided_slice %16 {offsets = [0, 128], sizes = [8, 128], strides = [1, 1]} : vector<8x512xf32> to vector<8x128xf32>
    %24 = arith.negf %23 : vector<8x128xf32>
    %25 = math.exp %24 : vector<8x128xf32>
    %cst_17 = arith.constant 1.000000e+00 : f32
    %26 = vector.broadcast %cst_17 : f32 to vector<8x128xf32>
    %27 = arith.addf %26, %25 : vector<8x128xf32>
    %28 = arith.divf %26, %27 : vector<8x128xf32>
    %29 = vector.extract_strided_slice %16 {offsets = [0, 256], sizes = [8, 128], strides = [1, 1]} : vector<8x512xf32> to vector<8x128xf32>
    %30 = math.tanh %29 : vector<8x128xf32>
    %31 = vector.extract_strided_slice %16 {offsets = [0, 384], sizes = [8, 128], strides = [1, 1]} : vector<8x512xf32> to vector<8x128xf32>
    %32 = arith.negf %31 : vector<8x128xf32>
    %33 = math.exp %32 : vector<8x128xf32>
    %cst_18 = arith.constant 1.000000e+00 : f32
    %34 = vector.broadcast %cst_18 : f32 to vector<8x128xf32>
    %35 = arith.addf %34, %33 : vector<8x128xf32>
    %36 = arith.divf %34, %35 : vector<8x128xf32>
    %37 = vector.extract_strided_slice %28 {offsets = [0, 0], sizes = [8, 64], strides = [1, 1]} : vector<8x128xf32> to vector<8x64xf32>
    %c0_19 = arith.constant 0 : index
    %c0_20 = arith.constant 0 : index
    %c0_21 = arith.constant 0 : index
    %38 = vector.load %arg2[%c0_19, %c0_20, %c0_21] : memref<4x8x64xf32, #tpu.memory_space<vmem>>, vector<1x8x64xf32>
    %39 = vector.shape_cast %38 : vector<1x8x64xf32> to vector<8x64xf32>
    %40 = arith.mulf %37, %39 : vector<8x64xf32>
    %41 = vector.extract_strided_slice %22 {offsets = [0, 0], sizes = [8, 64], strides = [1, 1]} : vector<8x128xf32> to vector<8x64xf32>
    %42 = vector.extract_strided_slice %30 {offsets = [0, 0], sizes = [8, 64], strides = [1, 1]} : vector<8x128xf32> to vector<8x64xf32>
    %43 = arith.mulf %41, %42 : vector<8x64xf32>
    %44 = arith.addf %40, %43 : vector<8x64xf32>
    %45 = vector.extract_strided_slice %36 {offsets = [0, 0], sizes = [8, 64], strides = [1, 1]} : vector<8x128xf32> to vector<8x64xf32>
    %46 = math.tanh %44 : vector<8x64xf32>
    %47 = arith.mulf %45, %46 : vector<8x64xf32>
    %c0_22 = arith.constant 0 : index
    %c0_23 = arith.constant 0 : index
    %c0_24 = arith.constant 0 : index
    %48 = vector.load %arg10[%c0_22, %c0_23, %c0_24] : memref<4x8x64xf32, #tpu.memory_space<vmem>>, vector<1x8x64xf32>
    %49 = vector.shape_cast %48 : vector<1x8x64xf32> to vector<8x64xf32>
    %50 = vector.shape_cast %47 : vector<8x64xf32> to vector<1x8x64xf32>
    tpu.vector_store %arg10[%c0_22, %c0_23, %c0_24], %50 {strides = array<i32>} : memref<4x8x64xf32, #tpu.memory_space<vmem>>, vector<1x8x64xf32>,
    %c0_25 = arith.constant 0 : index
    %c0_26 = arith.constant 0 : index
    %c0_27 = arith.constant 0 : index
    %51 = vector.load %arg11[%c0_25, %c0_26, %c0_27] : memref<4x8x64xf32, #tpu.memory_space<vmem>>, vector<1x8x64xf32>
    %52 = vector.shape_cast %51 : vector<1x8x64xf32> to vector<8x64xf32>
    %53 = vector.shape_cast %44 : vector<8x64xf32> to vector<1x8x64xf32>
    tpu.vector_store %arg11[%c0_25, %c0_26, %c0_27], %53 {strides = array<i32>} : memref<4x8x64xf32, #tpu.memory_space<vmem>>, vector<1x8x64xf32>,
    %54 = arith.truncf %47 : vector<8x64xf32> to vector<8x64xbf16>
    %c0_28 = arith.constant 0 : index
    %c0_29 = arith.constant 0 : index
    %55 = vector.load %arg12[%c0_28, %c0_29] : memref<8x256xbf16, #tpu.memory_space<vmem>>, vector<8x64xbf16>
    tpu.vector_store %arg12[%c0_28, %c0_29], %54 {strides = array<i32>} : memref<8x256xbf16, #tpu.memory_space<vmem>>, vector<8x64xbf16>,
    %56 = vector.extract_strided_slice %28 {offsets = [0, 64], sizes = [8, 64], strides = [1, 1]} : vector<8x128xf32> to vector<8x64xf32>
    %c1_30 = arith.constant 1 : index
    %c0_31 = arith.constant 0 : index
    %c0_32 = arith.constant 0 : index
    %57 = vector.load %arg2[%c1_30, %c0_31, %c0_32] : memref<4x8x64xf32, #tpu.memory_space<vmem>>, vector<1x8x64xf32>
    %58 = vector.shape_cast %57 : vector<1x8x64xf32> to vector<8x64xf32>
    %59 = arith.mulf %56, %58 : vector<8x64xf32>
    %60 = vector.extract_strided_slice %22 {offsets = [0, 64], sizes = [8, 64], strides = [1, 1]} : vector<8x128xf32> to vector<8x64xf32>
    %61 = vector.extract_strided_slice %30 {offsets = [0, 64], sizes = [8, 64], strides = [1, 1]} : vector<8x128xf32> to vector<8x64xf32>
    %62 = arith.mulf %60, %61 : vector<8x64xf32>
    %63 = arith.addf %59, %62 : vector<8x64xf32>
    %64 = vector.extract_strided_slice %36 {offsets = [0, 64], sizes = [8, 64], strides = [1, 1]} : vector<8x128xf32> to vector<8x64xf32>
    %65 = math.tanh %63 : vector<8x64xf32>
    %66 = arith.mulf %64, %65 : vector<8x64xf32>
    %c1_33 = arith.constant 1 : index
    %c0_34 = arith.constant 0 : index
    %c0_35 = arith.constant 0 : index
    %67 = vector.load %arg10[%c1_33, %c0_34, %c0_35] : memref<4x8x64xf32, #tpu.memory_space<vmem>>, vector<1x8x64xf32>
    %68 = vector.shape_cast %67 : vector<1x8x64xf32> to vector<8x64xf32>
    %69 = vector.shape_cast %66 : vector<8x64xf32> to vector<1x8x64xf32>
    tpu.vector_store %arg10[%c1_33, %c0_34, %c0_35], %69 {strides = array<i32>} : memref<4x8x64xf32, #tpu.memory_space<vmem>>, vector<1x8x64xf32>,
    %c1_36 = arith.constant 1 : index
    %c0_37 = arith.constant 0 : index
    %c0_38 = arith.constant 0 : index
    %70 = vector.load %arg11[%c1_36, %c0_37, %c0_38] : memref<4x8x64xf32, #tpu.memory_space<vmem>>, vector<1x8x64xf32>
    %71 = vector.shape_cast %70 : vector<1x8x64xf32> to vector<8x64xf32>
    %72 = vector.shape_cast %63 : vector<8x64xf32> to vector<1x8x64xf32>
    tpu.vector_store %arg11[%c1_36, %c0_37, %c0_38], %72 {strides = array<i32>} : memref<4x8x64xf32, #tpu.memory_space<vmem>>, vector<1x8x64xf32>,
    %73 = arith.truncf %66 : vector<8x64xf32> to vector<8x64xbf16>
    %c0_39 = arith.constant 0 : index
    %c64 = arith.constant 64 : index
    %74 = vector.load %arg12[%c0_39, %c64] : memref<8x256xbf16, #tpu.memory_space<vmem>>, vector<8x64xbf16>
    tpu.vector_store %arg12[%c0_39, %c64], %73 {strides = array<i32>} : memref<8x256xbf16, #tpu.memory_space<vmem>>, vector<8x64xbf16>,
    %c2 = arith.constant 2 : index
    %c0_40 = arith.constant 0 : index
    %c0_41 = arith.constant 0 : index
    %75 = vector.load %arg1[%c2, %c0_40, %c0_41] : memref<4x8x64xf32, #tpu.memory_space<vmem>>, vector<1x8x64xf32>
    %76 = vector.shape_cast %75 : vector<1x8x64xf32> to vector<8x64xf32>
    %77 = arith.truncf %76 : vector<8x64xf32> to vector<8x64xbf16>
    %c0_42 = arith.constant 0 : index
    %c128_43 = arith.constant 128 : index
    %78 = vector.load %arg12[%c0_42, %c128_43] : memref<8x256xbf16, #tpu.memory_space<vmem>>, vector<8x64xbf16>
    tpu.vector_store %arg12[%c0_42, %c128_43], %77 {strides = array<i32>} : memref<8x256xbf16, #tpu.memory_space<vmem>>, vector<8x64xbf16>,
    %c3 = arith.constant 3 : index
    %c0_44 = arith.constant 0 : index
    %c0_45 = arith.constant 0 : index
    %79 = vector.load %arg1[%c3, %c0_44, %c0_45] : memref<4x8x64xf32, #tpu.memory_space<vmem>>, vector<1x8x64xf32>
    %80 = vector.shape_cast %79 : vector<1x8x64xf32> to vector<8x64xf32>
    %81 = arith.truncf %80 : vector<8x64xf32> to vector<8x64xbf16>
    %c0_46 = arith.constant 0 : index
    %c192_47 = arith.constant 192 : index
    %82 = vector.load %arg12[%c0_46, %c192_47] : memref<8x256xbf16, #tpu.memory_space<vmem>>, vector<8x64xbf16>
    tpu.vector_store %arg12[%c0_46, %c192_47], %81 {strides = array<i32>} : memref<8x256xbf16, #tpu.memory_space<vmem>>, vector<8x64xbf16>,
    %c0_48 = arith.constant 0 : index
    %c0_49 = arith.constant 0 : index
    %83 = vector.load %arg12[%c0_48, %c0_49] : memref<8x256xbf16, #tpu.memory_space<vmem>>, vector<8x256xbf16>
    %c0_50 = arith.constant 0 : index
    %c0_51 = arith.constant 0 : index
    %84 = vector.load %arg5[%c0_50, %c0_51] : memref<256x512xbf16, #tpu.memory_space<vmem>>, vector<256x512xbf16>
    %cst_52 = arith.constant dense<0.000000e+00> : vector<8x512xf32>
    %85 = tpu.matmul %83, %84, %cst_52 {dimension_numbers = #tpu.dot_dimension_numbers<[1], [0], [0], [1], [0, 0, 1, 1], [], []>} : vector<8x256xbf16>, vector<256x512xbf16>, vector<8x512xf32> -> vector<8x512xf32>
    %c0_53 = arith.constant 0 : index
    %c0_54 = arith.constant 0 : index
    %86 = vector.load %arg6[%c0_53, %c0_54] : memref<1x512xf32, #tpu.memory_space<vmem>>, vector<1x512xf32>
    %87 = vector.broadcast %86 : vector<1x512xf32> to vector<8x512xf32>
    %88 = arith.addf %85, %87 : vector<8x512xf32>
    %89 = vector.extract_strided_slice %88 {offsets = [0, 0], sizes = [8, 128], strides = [1, 1]} : vector<8x512xf32> to vector<8x128xf32>
    %90 = arith.negf %89 : vector<8x128xf32>
    %91 = math.exp %90 : vector<8x128xf32>
    %cst_55 = arith.constant 1.000000e+00 : f32
    %92 = vector.broadcast %cst_55 : f32 to vector<8x128xf32>
    %93 = arith.addf %92, %91 : vector<8x128xf32>
    %94 = arith.divf %92, %93 : vector<8x128xf32>
    %95 = vector.extract_strided_slice %88 {offsets = [0, 128], sizes = [8, 128], strides = [1, 1]} : vector<8x512xf32> to vector<8x128xf32>
    %96 = arith.negf %95 : vector<8x128xf32>
    %97 = math.exp %96 : vector<8x128xf32>
    %cst_56 = arith.constant 1.000000e+00 : f32
    %98 = vector.broadcast %cst_56 : f32 to vector<8x128xf32>
    %99 = arith.addf %98, %97 : vector<8x128xf32>
    %100 = arith.divf %98, %99 : vector<8x128xf32>
    %101 = vector.extract_strided_slice %88 {offsets = [0, 256], sizes = [8, 128], strides = [1, 1]} : vector<8x512xf32> to vector<8x128xf32>
    %102 = math.tanh %101 : vector<8x128xf32>
    %103 = vector.extract_strided_slice %88 {offsets = [0, 384], sizes = [8, 128], strides = [1, 1]} : vector<8x512xf32> to vector<8x128xf32>
    %104 = arith.negf %103 : vector<8x128xf32>
    %105 = math.exp %104 : vector<8x128xf32>
    %cst_57 = arith.constant 1.000000e+00 : f32
    %106 = vector.broadcast %cst_57 : f32 to vector<8x128xf32>
    %107 = arith.addf %106, %105 : vector<8x128xf32>
    %108 = arith.divf %106, %107 : vector<8x128xf32>
    %109 = vector.extract_strided_slice %100 {offsets = [0, 0], sizes = [8, 64], strides = [1, 1]} : vector<8x128xf32> to vector<8x64xf32>
    %c2_58 = arith.constant 2 : index
    %c0_59 = arith.constant 0 : index
    %c0_60 = arith.constant 0 : index
    %110 = vector.load %arg2[%c2_58, %c0_59, %c0_60] : memref<4x8x64xf32, #tpu.memory_space<vmem>>, vector<1x8x64xf32>
    %111 = vector.shape_cast %110 : vector<1x8x64xf32> to vector<8x64xf32>
    %112 = arith.mulf %109, %111 : vector<8x64xf32>
    %113 = vector.extract_strided_slice %94 {offsets = [0, 0], sizes = [8, 64], strides = [1, 1]} : vector<8x128xf32> to vector<8x64xf32>
    %114 = vector.extract_strided_slice %102 {offsets = [0, 0], sizes = [8, 64], strides = [1, 1]} : vector<8x128xf32> to vector<8x64xf32>
    %115 = arith.mulf %113, %114 : vector<8x64xf32>
    %116 = arith.addf %112, %115 : vector<8x64xf32>
    %117 = vector.extract_strided_slice %108 {offsets = [0, 0], sizes = [8, 64], strides = [1, 1]} : vector<8x128xf32> to vector<8x64xf32>
    %118 = math.tanh %116 : vector<8x64xf32>
    %119 = arith.mulf %117, %118 : vector<8x64xf32>
    %c2_61 = arith.constant 2 : index
    %c0_62 = arith.constant 0 : index
    %c0_63 = arith.constant 0 : index
    %120 = vector.load %arg10[%c2_61, %c0_62, %c0_63] : memref<4x8x64xf32, #tpu.memory_space<vmem>>, vector<1x8x64xf32>
    %121 = vector.shape_cast %120 : vector<1x8x64xf32> to vector<8x64xf32>
    %122 = vector.shape_cast %119 : vector<8x64xf32> to vector<1x8x64xf32>
    tpu.vector_store %arg10[%c2_61, %c0_62, %c0_63], %122 {strides = array<i32>} : memref<4x8x64xf32, #tpu.memory_space<vmem>>, vector<1x8x64xf32>,
    %c2_64 = arith.constant 2 : index
    %c0_65 = arith.constant 0 : index
    %c0_66 = arith.constant 0 : index
    %123 = vector.load %arg11[%c2_64, %c0_65, %c0_66] : memref<4x8x64xf32, #tpu.memory_space<vmem>>, vector<1x8x64xf32>
    %124 = vector.shape_cast %123 : vector<1x8x64xf32> to vector<8x64xf32>
    %125 = vector.shape_cast %116 : vector<8x64xf32> to vector<1x8x64xf32>
    tpu.vector_store %arg11[%c2_64, %c0_65, %c0_66], %125 {strides = array<i32>} : memref<4x8x64xf32, #tpu.memory_space<vmem>>, vector<1x8x64xf32>,
    %126 = arith.truncf %119 : vector<8x64xf32> to vector<8x64xbf16>
    %c0_67 = arith.constant 0 : index
    %c0_68 = arith.constant 0 : index
    %127 = vector.load %arg12[%c0_67, %c0_68] : memref<8x256xbf16, #tpu.memory_space<vmem>>, vector<8x64xbf16>
    tpu.vector_store %arg12[%c0_67, %c0_68], %126 {strides = array<i32>} : memref<8x256xbf16, #tpu.memory_space<vmem>>, vector<8x64xbf16>,
    %128 = vector.extract_strided_slice %100 {offsets = [0, 64], sizes = [8, 64], strides = [1, 1]} : vector<8x128xf32> to vector<8x64xf32>
    %c3_69 = arith.constant 3 : index
    %c0_70 = arith.constant 0 : index
    %c0_71 = arith.constant 0 : index
    %129 = vector.load %arg2[%c3_69, %c0_70, %c0_71] : memref<4x8x64xf32, #tpu.memory_space<vmem>>, vector<1x8x64xf32>
    %130 = vector.shape_cast %129 : vector<1x8x64xf32> to vector<8x64xf32>
    %131 = arith.mulf %128, %130 : vector<8x64xf32>
    %132 = vector.extract_strided_slice %94 {offsets = [0, 64], sizes = [8, 64], strides = [1, 1]} : vector<8x128xf32> to vector<8x64xf32>
    %133 = vector.extract_strided_slice %102 {offsets = [0, 64], sizes = [8, 64], strides = [1, 1]} : vector<8x128xf32> to vector<8x64xf32>
    %134 = arith.mulf %132, %133 : vector<8x64xf32>
    %135 = arith.addf %131, %134 : vector<8x64xf32>
    %136 = vector.extract_strided_slice %108 {offsets = [0, 64], sizes = [8, 64], strides = [1, 1]} : vector<8x128xf32> to vector<8x64xf32>
    %137 = math.tanh %135 : vector<8x64xf32>
    %138 = arith.mulf %136, %137 : vector<8x64xf32>
    %c3_72 = arith.constant 3 : index
    %c0_73 = arith.constant 0 : index
    %c0_74 = arith.constant 0 : index
    %139 = vector.load %arg10[%c3_72, %c0_73, %c0_74] : memref<4x8x64xf32, #tpu.memory_space<vmem>>, vector<1x8x64xf32>
    %140 = vector.shape_cast %139 : vector<1x8x64xf32> to vector<8x64xf32>
    %141 = vector.shape_cast %138 : vector<8x64xf32> to vector<1x8x64xf32>
    tpu.vector_store %arg10[%c3_72, %c0_73, %c0_74], %141 {strides = array<i32>} : memref<4x8x64xf32, #tpu.memory_space<vmem>>, vector<1x8x64xf32>,
    %c3_75 = arith.constant 3 : index
    %c0_76 = arith.constant 0 : index
    %c0_77 = arith.constant 0 : index
    %142 = vector.load %arg11[%c3_75, %c0_76, %c0_77] : memref<4x8x64xf32, #tpu.memory_space<vmem>>, vector<1x8x64xf32>
    %143 = vector.shape_cast %142 : vector<1x8x64xf32> to vector<8x64xf32>
    %144 = vector.shape_cast %135 : vector<8x64xf32> to vector<1x8x64xf32>
    tpu.vector_store %arg11[%c3_75, %c0_76, %c0_77], %144 {strides = array<i32>} : memref<4x8x64xf32, #tpu.memory_space<vmem>>, vector<1x8x64xf32>,
    %145 = arith.truncf %138 : vector<8x64xf32> to vector<8x64xbf16>
    %c0_78 = arith.constant 0 : index
    %c64_79 = arith.constant 64 : index
    %146 = vector.load %arg12[%c0_78, %c64_79] : memref<8x256xbf16, #tpu.memory_space<vmem>>, vector<8x64xbf16>
    tpu.vector_store %arg12[%c0_78, %c64_79], %145 {strides = array<i32>} : memref<8x256xbf16, #tpu.memory_space<vmem>>, vector<8x64xbf16>,
    %c0_80 = arith.constant 0 : index
    %c0_81 = arith.constant 0 : index
    %147 = vector.load %arg12[%c0_80, %c0_81] : memref<8x256xbf16, #tpu.memory_space<vmem>>, vector<8x128xbf16>
    %c0_82 = arith.constant 0 : index
    %c0_83 = arith.constant 0 : index
    %148 = vector.load %arg7[%c0_82, %c0_83] : memref<128x128xbf16, #tpu.memory_space<vmem>>, vector<128x128xbf16>
    %cst_84 = arith.constant dense<0.000000e+00> : vector<8x128xf32>
    %149 = tpu.matmul %147, %148, %cst_84 {dimension_numbers = #tpu.dot_dimension_numbers<[1], [0], [0], [1], [0, 0, 1, 1], [], []>} : vector<8x128xbf16>, vector<128x128xbf16>, vector<8x128xf32> -> vector<8x128xf32>
    %c0_85 = arith.constant 0 : index
    %c0_86 = arith.constant 0 : index
    %150 = vector.load %arg8[%c0_85, %c0_86] : memref<1x128xf32, #tpu.memory_space<vmem>>, vector<1x128xf32>
    %151 = vector.broadcast %150 : vector<1x128xf32> to vector<8x128xf32>
    %152 = arith.addf %149, %151 : vector<8x128xf32>
    %c0_87 = arith.constant 0 : index
    %c0_88 = arith.constant 0 : index
    %153 = vector.load %arg9[%c0_87, %c0_88] : memref<8x128xf32, #tpu.memory_space<vmem>>, vector<8x128xf32>
    tpu.vector_store %arg9[%c0_87, %c0_88], %152 {strides = array<i32>} : memref<8x128xf32, #tpu.memory_space<vmem>>, vector<8x128xf32>,
    return
  }
}

</mosaic_0001>

<bundles_post_ra>
// kernel: decoder_forward.1
= control target key start
LH: loop header
LB: loop body
LE: loop exit
PB: predicated region body
PF: predicated region fallthrough
CT: control target
= control target key end

     0   :  { %17 = vsyncpa [#allocation4], 0  ;;  %s2013_s0 = inlined_call_operand.vmem [shape: f32[8,128], index: 0, kind: input, shape index: {}]   ;;  %s2014_s1 = inlined_call_operand.vmem [shape: f32[4,8,64], index: 1, kind: input, shape index: {}, may-alias: {1,10}]   ;;  %s2015_s2 = inlined_call_operand.vmem [shape: f32[4,8,64], index: 2, kind: input, shape index: {}, may-alias: {2,11}]   ;;  %s2016_s3 = inlined_call_operand.hbm [shape: bf16[256,512], index: 3, kind: input, shape index: {}]   ;;  %s2017_s4 = inlined_call_operand.vmem [shape: f32[1,512], index: 4, kind: input, shape index: {}]   ;;  %s2018_s5 = inlined_call_operand.hbm [shape: bf16[256,512], index: 5, kind: input, shape index: {}]   ;;  %s2019_s6 = inlined_call_operand.vmem [shape: f32[1,512], index: 6, kind: input, shape index: {}]   ;;  %s2020_s7 = inlined_call_operand.vmem [shape: bf16[128,128], index: 7, kind: input, shape index: {}]   ;;  %s2021_s8 = inlined_call_operand.vmem [shape: f32[1,128], index: 8, kind: input, shape index: {}]   ;;  %s2022_s9 = inlined_call_operand.vmem [shape: f32[8,128], index: 9, kind: output, shape index: {0}]   ;;  %s2023_s10 = inlined_call_operand.vmem [shape: f32[4,8,64], index: 10, kind: output, shape index: {1}, may-alias: {1,10}]   ;;  %s2024_s11 = inlined_call_operand.vmem [shape: f32[4,8,64], index: 11, kind: output, shape index: {2}, may-alias: {2,11}]  }
   0x1   :  { %18 = vsyncpa [#allocation6], 0  ;;  %s1804_s17 = smov [#allocation3]  }
   0x2   :  { %s30_s18 = sshll.u32 %s1804_s17, 4  ;;  %s31_s18 = int_to_ptr.vmem [resolvable:$true] %s30_s18 }
   0x3   :  { %s1768_s19 = scalar_lea.vmem %s31_s18, 8192  ;;  %p1773_p1 = scmp.lt.s32.totalorder %s31_s18, %s31_s18 }
   0x4   :  { %p1769_p0 = scmp.ne.s32.totalorder %s31_s18, %s1768_s19  ;;  %p1774_p2 = scmp.lt.s32.totalorder %s1768_s19, %s1768_s19 }
   0x6   :  { %p1775_p3 = por %p1774_p2, %p1773_p1 }
   0x8   :  { %p1776_p4 = pnand %p1775_p3, %p1769_p0 }
   0xa   :  { %1779 = shalt.err (!%p1776_p4)
}
   0xb   :  { %s1805_s20 = smov 256   ;;  %s1806_s21 = smov 16  }
   0xc   :  { %36 = dma.hbm_to_vmem [thread:$0]  %s2016_s3, 8192, %s31_s18, [#allocation4], %s1805_s20, %s1805_s20, %s1806_s21  }
   0xd   :  { %s1807_s24 = smov [#allocation5]  }
   0xe   :  { %s44_s25 = sshll.u32 %s1807_s24, 4  ;;  %s45_s25 = int_to_ptr.vmem [resolvable:$true] %s44_s25 }
   0xf   :  { %s1788_s26 = scalar_lea.vmem %s45_s25, 8192  ;;  %p1793_p6 = scmp.lt.s32.totalorder %s45_s25, %s45_s25 }
  0x10   :  { %p1789_p5 = scmp.ne.s32.totalorder %s45_s25, %s1788_s26  ;;  %p1794_p7 = scmp.lt.s32.totalorder %s1788_s26, %s1788_s26 }
  0x12   :  { %p1795_p8 = por %p1794_p7, %p1793_p6 }
  0x14   :  { %p1796_p9 = pnand %p1795_p8, %p1789_p5 }
  0x16   :  { %1799 = shalt.err (!%p1796_p9)
}
  0x17   :  { %50 = dma.hbm_to_vmem [thread:$0]  %s2018_s5, 8192, %s45_s25, [#allocation6], %s1805_s20, %s1805_s20, %s1806_s21  }
  0x18   :  { %1800 = dma.done.wait [#allocation4], 8192  }
  0x19   :  { %1801 = vsyncadd [#allocation4], 4294959104 }
  0x1a   :  { %1802 = dma.done.wait [#allocation6], 8192  }
  0x1b   :  { %1803 = vsyncadd [#allocation6], 4294959104  ;;  %v1325_v0 = vld [vmem:[%s2014_s1 + $0x8] sm:$0xff]  ;;  %v1526_v3 = vld [vmem:[#allocation3 + $0xec] ss:$16 sps:$4 sm:$0xff]   ;;  %s1808_s30 = smov 64  }
  0x1c   :  { %v1486_v1 = vpack.c.bf16 %v1325_v0, %v1325_v0  ;;  %v1524_v2 = vld [vmem:[#allocation3 + $0xe4] ss:$16 sps:$4 sm:$0xff]   ;;  %v1528_v4 = vld [vmem:[#allocation3 + $0xe0] ss:$16 sps:$4 sm:$0xff]   ;;  %v1529_v5 = vld [vmem:[#allocation3 + $0xe8] ss:$16 sps:$4 sm:$0xff]   ;;  %537 = vmatprep.subr.bf16.mxu1 %v1526_v3 }
  0x1d   :  { %496 = vmatprep.subr.bf16.mxu0 %v1524_v2  ;;  %v1530_v6 = vld [vmem:[#allocation3 + $0xc4] ss:$16 sps:$4 sm:$0xff]   ;;  %v1532_v7 = vld [vmem:[#allocation3 + $0xcc] ss:$16 sps:$4 sm:$0xff]   ;;  %538 = vmatpush1.bf16.msra.mxu1 %v1529_v5  ;;  %v1534_v8 = vld [vmem:[#allocation3 + $0xc0] ss:$16 sps:$4 sm:$0xff]  }
  0x1e   :  { %77 = vrot.lane.b32.xlu0 %v1486_v1, %s1808_s30  ;;  %497 = vmatpush1.bf16.msra.mxu0 %v1528_v4  ;;  %v1535_v9 = vld [vmem:[#allocation3 + $0xc8] ss:$16 sps:$4 sm:$0xff]   ;;  %v1536_v10 = vld [vmem:[#allocation3 + $0xa4] ss:$16 sps:$4 sm:$0xff]   ;;  %v1538_v11 = vld [vmem:[#allocation3 + $0xac] ss:$16 sps:$4 sm:$0xff]  }
  0x1f   :  { %498 = vmatprep.subr.bf16.mxu0 %v1530_v6  ;;  %539 = vmatprep.subr.bf16.mxu1 %v1532_v7  ;;  %v1540_v12 = vld [vmem:[#allocation3 + $0xa0] ss:$16 sps:$4 sm:$0xff]   ;;  %v1541_v13 = vld [vmem:[#allocation3 + $0xa8] ss:$16 sps:$4 sm:$0xff]   ;;  %v1542_v14 = vld [vmem:[#allocation3 + $0x84] ss:$16 sps:$4 sm:$0xff]  }
  0x20   :  { %v1544_v15 = vld [vmem:[#allocation3 + $0x8c] ss:$16 sps:$4 sm:$0xff]   ;;  %v1546_v16 = vld [vmem:[#allocation3 + $0x80] ss:$16 sps:$4 sm:$0xff]   ;;  %v1547_v17 = vld [vmem:[#allocation3 + $0x88] ss:$16 sps:$4 sm:$0xff]  }
  0x21   :  { %540 = vmatpush1.bf16.msra.mxu1 %v1535_v9  ;;  %v1548_v18 = vld [vmem:[#allocation3 + $0x64] ss:$16 sps:$4 sm:$0xff]   ;;  %v1550_v19 = vld [vmem:[#allocation3 + $0x6c] ss:$16 sps:$4 sm:$0xff]   ;;  %v1552_v20 = vld [vmem:[#allocation3 + $0x60] ss:$16 sps:$4 sm:$0xff]  }
  0x22   :  { %499 = vmatpush1.bf16.msra.mxu0 %v1534_v8  ;;  %541 = vmatprep.subr.bf16.mxu1 %v1538_v11  ;;  %v1553_v21 = vld [vmem:[#allocation3 + $0x68] ss:$16 sps:$4 sm:$0xff]   ;;  %v1554_v22 = vld [vmem:[#allocation3 + $0x44] ss:$16 sps:$4 sm:$0xff]   ;;  %v1556_v23 = vld [vmem:[#allocation3 + $0x4c] ss:$16 sps:$4 sm:$0xff]  }
  0x23   :  { %500 = vmatprep.subr.bf16.mxu0 %v1536_v10  ;;  %v1558_v24 = vld [vmem:[#allocation3 + $0x40] ss:$16 sps:$4 sm:$0xff]   ;;  %v1559_v25 = vld [vmem:[#allocation3 + $0x48] ss:$16 sps:$4 sm:$0xff]   ;;  %v1560_v26 = vld [vmem:[#allocation3 + $0x24] ss:$16 sps:$4 sm:$0xff]  }
  0x24   :  { %v1562_v27 = vld [vmem:[#allocation3 + $0x2c] ss:$16 sps:$4 sm:$0xff]   ;;  %v1564_v28 = vld [vmem:[#allocation3 + $0x20] ss:$16 sps:$4 sm:$0xff]   ;;  %v1565_v29 = vld [vmem:[#allocation3 + $0x28] ss:$16 sps:$4 sm:$0xff]  }
  0x25   :  { %542 = vmatpush1.bf16.msra.mxu1 %v1541_v13  ;;  %v1566_v30 = vld [vmem:[#allocation3 + $0x4] ss:$16 sps:$4 sm:$0xff]   ;;  %v1568_v31 = vld [vmem:[#allocation3 + $0xc] ss:$16 sps:$4 sm:$0xff]   ;;  %v1570_v32 = vld [vmem:[#allocation3] ss:$16 sps:$4 sm:$0xff]  }
  0x26   :  { %501 = vmatpush1.bf16.msra.mxu0 %v1540_v12  ;;  %543 = vmatprep.subr.bf16.mxu1 %v1544_v15  ;;  %v1571_v33 = vld [vmem:[#allocation3 + $0x8] ss:$16 sps:$4 sm:$0xff]   ;;  %v1572_v34 = vld [vmem:[#allocation3 + $0x1e4] ss:$16 sps:$4 sm:$0xff]   ;;  %v1574_v35 = vld [vmem:[#allocation3 + $0x1ec] ss:$16 sps:$4 sm:$0xff]  }
  0x27   :  { %502 = vmatprep.subr.bf16.mxu0 %v1542_v14  ;;  %v1576_v36 = vld [vmem:[#allocation3 + $0x1e0] ss:$16 sps:$4 sm:$0xff]   ;;  %v1577_v37 = vld [vmem:[#allocation3 + $0x1e8] ss:$16 sps:$4 sm:$0xff]   ;;  %v1578_v38 = vld [vmem:[#allocation3 + $0x1c4] ss:$16 sps:$4 sm:$0xff]  }
  0x28   :  { %v1580_v39 = vld [vmem:[#allocation3 + $0x1cc] ss:$16 sps:$4 sm:$0xff]   ;;  %v1582_v40 = vld [vmem:[#allocation3 + $0x1c0] ss:$16 sps:$4 sm:$0xff]   ;;  %v1583_v41 = vld [vmem:[#allocation3 + $0x1c8] ss:$16 sps:$4 sm:$0xff]  }
  0x29   :  { %544 = vmatpush1.bf16.msra.mxu1 %v1547_v17  ;;  %v1584_v42 = vld [vmem:[#allocation3 + $0x1a4] ss:$16 sps:$4 sm:$0xff]   ;;  %vm69_vm0 = vcmask 519168   ;;  %v64_v43 = vld [vmem:[%s2013_s0] sm:$0xff]  ;;  %v1588_v48 = vld [vmem:[#allocation3 + $0x1a0] ss:$16 sps:$4 sm:$0xff]  }
  0x2a   :  { %503 = vmatpush1.bf16.msra.mxu0 %v1546_v16  ;;  %545 = vmatprep.subr.bf16.mxu1 %v1550_v19  ;;  %v67_v44 = vld [vmem:[%s2014_s1] sm:$0xff]  ;;  %v65_v46 = vpack.c.bf16 %v64_v43, %v64_v43  ;;  %v1590_v50 = vld [vmem:[#allocation3 + $0x184] ss:$16 sps:$4 sm:$0xff]   ;;  %v1594_v52 = vld [vmem:[#allocation3 + $0x180] ss:$16 sps:$4 sm:$0xff]   ;;  %vm80_vm1 = vcmask 1043968  }
  0x2b   :  { %504 = vmatprep.subr.bf16.mxu0 %v1548_v18  ;;  %v1586_v45 = vld [vmem:[#allocation3 + $0x1ac] ss:$16 sps:$4 sm:$0xff]   ;;  %v68_v47 = vpack.c.bf16 %v67_v44, %v67_v44  ;;  %v1589_v49 = vld [vmem:[#allocation3 + $0x1a8] ss:$16 sps:$4 sm:$0xff]   ;;  %v1596_v54 = vld [vmem:[#allocation3 + $0x164] ss:$16 sps:$4 sm:$0xff]  }
  0x2c   :  { %66 = vst [vmem:[#allocation2] sm:$0xf] %v65_v46  ;;  %v1592_v51 = vld [vmem:[#allocation3 + $0x18c] ss:$16 sps:$4 sm:$0xff]   ;;  %v1595_v53 = vld [vmem:[#allocation3 + $0x188] ss:$16 sps:$4 sm:$0xff]  }
  0x2d   :  { %546 = vmatpush1.bf16.msra.mxu1 %v1553_v21  ;;  %70 = vst.msk [vmem:[#allocation2 + $0x4] sm:$0xf] %vm69_vm0, %v68_v47  ;;  %v1396_v55 = vld [vmem:[%s2015_s2 + $0x8] sm:$0xff]  ;;  %v1400_v56 = vld [vmem:[%s2014_s1 + $0x18] sm:$0xff]  ;;  %v1598_v57 = vld [vmem:[#allocation3 + $0x16c] ss:$16 sps:$4 sm:$0xff]  }
  0x2e   :  { %505 = vmatpush1.bf16.msra.mxu0 %v1552_v20  ;;  %547 = vmatprep.subr.bf16.mxu1 %v1556_v23  ;;  %v1487_v58 = vpack.c.bf16 %v1400_v56, %v1400_v56  ;;  %v1600_v59 = vld [vmem:[#allocation3 + $0x160] ss:$16 sps:$4 sm:$0xff]   ;;  %v1601_v60 = vld [vmem:[#allocation3 + $0x168] ss:$16 sps:$4 sm:$0xff]   ;;  %v1602_v63 = vld [vmem:[#allocation3 + $0x144] ss:$16 sps:$4 sm:$0xff]  }
  0x2f   :  { %506 = vmatprep.subr.bf16.mxu0 %v1554_v22  ;;  %611 = vrot.lane.b32.xlu0 %v1396_v55, %s1808_s30  ;;  %v123_v61 = vld [vmem:[#allocation3 + $0x140] sm:$0xff]  ;;  %v125_v62 = vld [vmem:[#allocation3 + $0x150] sm:$0xff]  ;;  %v124_v0 = vld [vmem:[#allocation3 + $0x148] sm:$0xff]  ;;  %vm603_vm2 = vcmask 523264   ;;  %vm1810_vm3 = vmmov 0  }
  0x30   :  { %642 = vrot.lane.b32.xlu1 %v1487_v58, %s1808_s30  ;;  %v126_v1 = vld [vmem:[#allocation3 + $0x158] sm:$0xff]  ;;  %v1606_v3 = vld [vmem:[#allocation3 + $0x124] ss:$16 sps:$4 sm:$0xff]   ;;  %v1369_v4 = vcombine.low %v123_v61, %v125_v62  ;;  %v1610_v7 = vld [vmem:[#allocation3 + $0x120] ss:$16 sps:$4 sm:$0xff]  }
  0x31   :  { %548 = vmatpush1.bf16.msra.mxu1 %v1559_v25  ;;  %v1604_v2 = vld [vmem:[#allocation3 + $0x14c] ss:$16 sps:$4 sm:$0xff]   ;;  %v1371_v6 = vcombine.low %v124_v0, %v126_v1  ;;  %v1611_v8 = vld [vmem:[#allocation3 + $0x128] ss:$16 sps:$4 sm:$0xff]   ;;  %v1612_v9 = vld [vmem:[#allocation3 + $0x104] ss:$16 sps:$4 sm:$0xff]  }
  0x32   :  { %507 = vmatpush1.bf16.msra.mxu0 %v1558_v24  ;;  %549 = vmatprep.subr.bf16.mxu1 %v1562_v27  ;;  %v1608_v5 = vld [vmem:[#allocation3 + $0x12c] ss:$16 sps:$4 sm:$0xff]   ;;  %v1616_v11 = vld [vmem:[#allocation3 + $0x100] ss:$16 sps:$4 sm:$0xff]   ;;  %v1617_v12 = vld [vmem:[#allocation3 + $0x108] ss:$16 sps:$4 sm:$0xff]  }
  0x33   :  { %508 = vmatprep.subr.bf16.mxu0 %v1560_v26  ;;  %v1614_v10 = vld [vmem:[#allocation3 + $0x10c] ss:$16 sps:$4 sm:$0xff]   ;;  %v1620_v19 = vld [vmem:[#allocation5 + $0xe4] ss:$16 sps:$4 sm:$0xff]   ;;  %v1618_v21 = vld [vmem:[#allocation5 + $0xe0] ss:$16 sps:$4 sm:$0xff]  }
  0x34   :  { %v1399_v14 = vld [vmem:[%s2014_s1 + $0x10] sm:$0xff]  ;;  %v1626_v23 = vld [vmem:[#allocation5 + $0xc4] ss:$16 sps:$4 sm:$0xff]   ;;  %v1624_v25 = vld [vmem:[#allocation5 + $0xc0] ss:$16 sps:$4 sm:$0xff]  }
  0x35   :  { %550 = vmatpush1.bf16.msra.mxu1 %v1565_v29  ;;  %v634_v15 = vpack.c.bf16 %v1399_v14, %v1399_v14  ;;  %v1623_v20 = vld [vmem:[#allocation5 + $0xec] ss:$16 sps:$4 sm:$0xff]   ;;  %v1621_v22 = vld [vmem:[#allocation5 + $0xe8] ss:$16 sps:$4 sm:$0xff]   ;;  %v1632_v27 = vld [vmem:[#allocation5 + $0xa4] ss:$16 sps:$4 sm:$0xff]  }
  0x36   :  { %509 = vmatpush1.bf16.msra.mxu0 %v1564_v28  ;;  %551 = vmatprep.subr.bf16.mxu1 %v1568_v31  ;;  %v1629_v24 = vld [vmem:[#allocation5 + $0xcc] ss:$16 sps:$4 sm:$0xff]   ;;  %v1627_v26 = vld [vmem:[#allocation5 + $0xc8] ss:$16 sps:$4 sm:$0xff]   ;;  %v1630_v29 = vld [vmem:[#allocation5 + $0xa0] ss:$16 sps:$4 sm:$0xff]  }
  0x37   :  { %510 = vmatprep.subr.bf16.mxu0 %v1566_v30  ;;  %v1635_v28 = vld [vmem:[#allocation5 + $0xac] ss:$16 sps:$4 sm:$0xff]   ;;  %v1633_v30 = vld [vmem:[#allocation5 + $0xa8] ss:$16 sps:$4 sm:$0xff]   ;;  %v1638_v31 = vld [vmem:[#allocation5 + $0x84] ss:$16 sps:$4 sm:$0xff]  }
  0x38   :  { %v1656_v43 = vld [vmem:[#allocation5 + $0x24] ss:$16 sps:$4 sm:$0xff]   ;;  %v1659_v44 = vld [vmem:[#allocation5 + $0x2c] ss:$16 sps:$4 sm:$0xff]   ;;  %v1657_v46 = vld [vmem:[#allocation5 + $0x28] ss:$16 sps:$4 sm:$0xff]  }
  0x39   :  { %552 = vmatpush1.bf16.msra.mxu1 %v1571_v33  ;;  %v1636_v33 = vld [vmem:[#allocation5 + $0x80] ss:$16 sps:$4 sm:$0xff]   ;;  %v1662_v47 = vld [vmem:[#allocation5 + $0x4] ss:$16 sps:$4 sm:$0xff]   ;;  %v1669_v55 = vld [vmem:[#allocation5 + $0x1e8] ss:$16 sps:$4 sm:$0xff]  }
  0x3a   :  { %511 = vmatpush1.bf16.msra.mxu0 %v1570_v32  ;;  %553 = vmatprep.subr.bf16.mxu1 %v1574_v35  ;;  %v1641_v32 = vld [vmem:[#allocation5 + $0x8c] ss:$16 sps:$4 sm:$0xff]   ;;  %v1644_v35 = vld [vmem:[#allocation5 + $0x64] ss:$16 sps:$4 sm:$0xff]   ;;  %v1672_v58 = vld [vmem:[#allocation5 + $0x1c0] ss:$16 sps:$4 sm:$0xff]  }
  0x3b   :  { %512 = vmatprep.subr.bf16.mxu0 %v1572_v34  ;;  %v1639_v34 = vld [vmem:[#allocation5 + $0x88] ss:$16 sps:$4 sm:$0xff]   ;;  %v1674_v56 = vld [vmem:[#allocation5 + $0x1c4] ss:$16 sps:$4 sm:$0xff]   ;;  %v1683_v61 = vld [vmem:[#allocation5 + $0x1ac] ss:$16 sps:$4 sm:$0xff]  }
  0x3c   :  { %v1678_v62 = vld [vmem:[#allocation5 + $0x1a0] ss:$16 sps:$4 sm:$0xff]   ;;  %v1686_v0 = vld [vmem:[#allocation5 + $0x184] ss:$16 sps:$4 sm:$0xff]   ;;  %v1689_v1 = vld [vmem:[#allocation5 + $0x18c] ss:$16 sps:$4 sm:$0xff]  }
  0x3d   :  { %554 = vmatpush2.bf16.msra.mxu1 %v1577_v37  ;;  %v1642_v37 = vld [vmem:[#allocation5 + $0x60] ss:$16 sps:$4 sm:$0xff]  }
  0x3e   :  { %513 = vmatpush2.bf16.msra.mxu0 %v1576_v36  ;;  %555 = vmatprep.subr.bf16.mxu1 %v1580_v39  ;;  %v1647_v36 = vld [vmem:[#allocation5 + $0x6c] ss:$16 sps:$4 sm:$0xff]   ;;  %v1650_v39 = vld [vmem:[#allocation5 + $0x44] ss:$16 sps:$4 sm:$0xff]   ;;  %v1702_v14 = vld [vmem:[#allocation5 + $0x120] ss:$16 sps:$4 sm:$0xff]  }
  0x3f   :  { %514 = vmatprep.subr.bf16.mxu0 %v1578_v38  ;;  %v1645_v38 = vld [vmem:[#allocation5 + $0x68] ss:$16 sps:$4 sm:$0xff]  }
  0x41   :  { %556 = vmatpush2.bf16.msra.mxu1 %v1583_v41  ;;  %v1651_v41 = vld [vmem:[#allocation5 + $0x48] ss:$16 sps:$4 sm:$0xff]  }
  0x42   :  { %515 = vmatpush2.bf16.msra.mxu0 %v1582_v40  ;;  %557 = vmatprep.subr.bf16.mxu1 %v1586_v45  ;;  %v1648_v40 = vld [vmem:[#allocation5 + $0x40] ss:$16 sps:$4 sm:$0xff]  }
  0x43   :  { %516 = vmatprep.subr.bf16.mxu0 %v1584_v42  ;;  %v1653_v42 = vld [vmem:[#allocation5 + $0x4c] ss:$16 sps:$4 sm:$0xff]   ;;  %v1654_v45 = vld [vmem:[#allocation5 + $0x20] ss:$16 sps:$4 sm:$0xff]  }
  0x45   :  { %558 = vmatpush2.bf16.msra.mxu1 %v1589_v49  ;;  %v1660_v49 = vld [vmem:[#allocation5] ss:$16 sps:$4 sm:$0xff]  }
  0x46   :  { %517 = vmatpush2.bf16.msra.mxu0 %v1588_v48  ;;  %559 = vmatprep.subr.bf16.mxu1 %v1592_v51  ;;  %v1665_v48 = vld [vmem:[#allocation5 + $0xc] ss:$16 sps:$4 sm:$0xff]   ;;  %v1474_v51 = vld [vmem:[%s2015_s2 + $0x18] sm:$0xff] }
  0x47   :  { %518 = vmatprep.subr.bf16.mxu0 %v1590_v50  ;;  %v1663_v50 = vld [vmem:[#allocation5 + $0x8] ss:$16 sps:$4 sm:$0xff]   ;;  %1177 = vrot.lane.b32.xlu1 %v1474_v51, %s1808_s30 }
  0x49   :  { %560 = vmatpush2.bf16.msra.mxu1 %v1595_v53  ;;  %v1671_v53 = vld [vmem:[#allocation5 + $0x1ec] ss:$16 sps:$4 sm:$0xff]  }
  0x4a   :  { %519 = vmatpush2.bf16.msra.mxu0 %v1594_v52  ;;  %561 = vmatprep.subr.bf16.mxu1 %v1598_v57  ;;  %v1668_v52 = vld [vmem:[#allocation5 + $0x1e4] ss:$16 sps:$4 sm:$0xff]   ;;  %v1677_v57 = vld [vmem:[#allocation5 + $0x1cc] ss:$16 sps:$4 sm:$0xff]  }
  0x4b   :  { %520 = vmatprep.subr.bf16.mxu0 %v1596_v54  ;;  %v1666_v54 = vld [vmem:[#allocation5 + $0x1e0] ss:$16 sps:$4 sm:$0xff]  }
  0x4d   :  { %562 = vmatpush2.bf16.msra.mxu1 %v1601_v60  ;;  %v1680_v60 = vld [vmem:[#allocation5 + $0x1a4] ss:$16 sps:$4 sm:$0xff]  }
  0x4e   :  { %521 = vmatpush2.bf16.msra.mxu0 %v1600_v59  ;;  %563 = vmatprep.subr.bf16.mxu1 %v1604_v2  ;;  %v1675_v59 = vld [vmem:[#allocation5 + $0x1c8] ss:$16 sps:$4 sm:$0xff]   ;;  %v1684_v2 = vld [vmem:[#allocation5 + $0x180] ss:$16 sps:$4 sm:$0xff]  }
  0x4f   :  { %522 = vmatprep.subr.bf16.mxu0 %v1602_v63  ;;  %v1681_v63 = vld [vmem:[#allocation5 + $0x1a8] ss:$16 sps:$4 sm:$0xff]  }
  0x51   :  { %564 = vmatpush2.bf16.msra.mxu1 %v1371_v6  ;;  %v1690_v6 = vld [vmem:[#allocation5 + $0x160] ss:$16 sps:$4 sm:$0xff]  }
  0x52   :  { %523 = vmatpush2.bf16.msra.mxu0 %v1369_v4  ;;  %565 = vmatprep.subr.bf16.mxu1 %v1608_v5  ;;  %v1692_v4 = vld [vmem:[#allocation5 + $0x164] ss:$16 sps:$4 sm:$0xff]   ;;  %v1695_v5 = vld [vmem:[#allocation5 + $0x16c] ss:$16 sps:$4 sm:$0xff]  }
  0x53   :  { %524 = vmatprep.subr.bf16.mxu0 %v1606_v3  ;;  %v1687_v3 = vld [vmem:[#allocation5 + $0x188] ss:$16 sps:$4 sm:$0xff]  }
  0x55   :  { %566 = vmatpush2.bf16.msra.mxu1 %v1611_v8  ;;  %v1698_v8 = vld [vmem:[#allocation5 + $0x144] ss:$16 sps:$4 sm:$0xff]  }
  0x56   :  { %525 = vmatpush2.bf16.msra.mxu0 %v1610_v7  ;;  %567 = vmatprep.subr.bf16.mxu1 %v1614_v10  ;;  %v1693_v7 = vld [vmem:[#allocation5 + $0x168] ss:$16 sps:$4 sm:$0xff]   ;;  %v1696_v10 = vld [vmem:[#allocation5 + $0x140] ss:$16 sps:$4 sm:$0xff]  }
  0x57   :  { %526 = vmatprep.subr.bf16.mxu0 %v1612_v9  ;;  %v1701_v9 = vld [vmem:[#allocation5 + $0x14c] ss:$16 sps:$4 sm:$0xff]  }
  0x59   :  { %568 = vmatpush2.bf16.msra.mxu1 %v1617_v12 }
  0x5a   :  { %527 = vmatpush2.bf16.msra.mxu0 %v1616_v11  ;;  %1101 = vmatprep.subr.bf16.mxu1 %v1623_v20  ;;  %v1699_v11 = vld [vmem:[#allocation5 + $0x148] ss:$16 sps:$4 sm:$0xff]  }
  0x5b   :  { %1060 = vmatprep.subr.bf16.mxu0 %v1620_v19  ;;  %v1708_v19 = vld [vmem:[#allocation5 + $0x100] ss:$16 sps:$4 sm:$0xff]   ;;  %v1711_v20 = vld [vmem:[#allocation5 + $0x108] ss:$16 sps:$4 sm:$0xff]  }
  0x90   :  { %v78_v13 = vpop.permute.xlu0 %77 }
  0x91   :  { %81 = vst.msk [vmem:[#allocation2 + $0x4] sm:$0xf] %vm80_vm1, %v78_v13  ;;  %v1704_v13 = vld [vmem:[#allocation5 + $0x124] ss:$16 sps:$4 sm:$0xff]  }
  0x98   :  { %v82_v16 = vld [vmem:[#allocation2] sm:$0xff] }
  0x99   :  { %635 = vst.msk [vmem:[#allocation2 + $0x4] sm:$0xf] %vm69_vm0, %v634_v15  ;;  %v1328_v17 = vcombine.high %v82_v16, %v82_v16  ;;  %v1327_v18 = vcombine.low %v82_v16, %v82_v16  ;;  %v1705_v15 = vld [vmem:[#allocation5 + $0x128] ss:$16 sps:$4 sm:$0xff]   ;;  %v1707_v16 = vld [vmem:[#allocation5 + $0x12c] ss:$16 sps:$4 sm:$0xff]  }
  0x9b   :  { %528 = vmatprep.mubr.bf16.mxu0 %v1328_v17  ;;  %569 = vmatprep.mubr.bf16.mxu1 %v1328_v17  ;;  %v1710_v17 = vld [vmem:[#allocation5 + $0x104] ss:$16 sps:$4 sm:$0xff]  }
  0x9c   :  { %529 = vmatmul.mubr.bf16.vlgmr.msra.gmra.mxu0 %v1327_v18  ;;  %570 = vmatmul.mubr.bf16.vlgmr.msra.gmra.mxu1 %v1327_v18  ;;  %v1713_v18 = vld [vmem:[#allocation5 + $0x10c] ss:$16 sps:$4 sm:$0xff]  }
  0x9d   :  { %1061 = vmatpush1.bf16.msra.mxu0 %v1618_v21  ;;  %1102 = vmatpush1.bf16.msra.mxu1 %v1621_v22  ;;  %v149_v21 = vlaneseq }
  0x9e   :  { %1062 = vmatprep.subr.bf16.mxu0 %v1626_v23  ;;  %1103 = vmatprep.subr.bf16.mxu1 %v1629_v24  ;;  %v147_v24 = vld [vmem:[%s2017_s4] sm:$0xf] }
  0x9f   :  { %v1906_v22 = vshrl.u32 %v149_v21, 7  ;;  %v711_v21 = vld [vmem:[%s2019_s6] sm:$0xf] }
  0xa1   :  { %1063 = vmatpush1.bf16.msra.mxu0 %v1624_v25  ;;  %1104 = vmatpush1.bf16.msra.mxu1 %v1627_v26  ;;  %v151_v23 = vsub.s32 0, %v1906_v22  ;;  %v155_v25 = vsub.s32 1, %v1906_v22 }
  0xa2   :  { %1064 = vmatprep.subr.bf16.mxu0 %v1632_v27  ;;  %1105 = vmatprep.subr.bf16.mxu1 %v1635_v28  ;;  %v643_v12 = vpop.permute.xlu1 %642 }
  0xa3   :  { %645 = vst.msk [vmem:[#allocation2 + $0x4] sm:$0xf] %vm80_vm1, %v643_v12  ;;  %v152_v26 = vrot.slane %v147_v24, %v151_v23  ;;  %v156_v27 = vrot.slane %v147_v24, %v155_v25  ;;  %v1809_v12 = vmov 0.0  }
  0xa5   :  { %1065 = vmatpush1.bf16.msra.mxu0 %v1630_v29  ;;  %1106 = vmatpush1.bf16.msra.mxu1 %v1633_v30 }
  0xa6   :  { %1066 = vmatprep.subr.bf16.mxu0 %v1638_v31  ;;  %1107 = vmatprep.subr.bf16.mxu1 %v1641_v32 }
  0xa9   :  { %1067 = vmatpush1.bf16.msra.mxu0 %v1636_v33  ;;  %1108 = vmatpush1.bf16.msra.mxu1 %v1639_v34 }
  0xaa   :  { %1068 = vmatprep.subr.bf16.mxu0 %v1644_v35  ;;  %1109 = vmatprep.subr.bf16.mxu1 %v1647_v36  ;;  %v163_v35 = vsub.s32 3, %v1906_v22 }
  0xad   :  { %1069 = vmatpush1.bf16.msra.mxu0 %v1642_v37  ;;  %1110 = vmatpush1.bf16.msra.mxu1 %v1645_v38 }
  0xae   :  { %1070 = vmatprep.subr.bf16.mxu0 %v1650_v39  ;;  %1111 = vmatprep.subr.bf16.mxu1 %v1653_v42  ;;  %v159_v42 = vsub.s32 2, %v1906_v22 }
  0xb1   :  { %1071 = vmatpush1.bf16.msra.mxu0 %v1648_v40  ;;  %1112 = vmatpush1.bf16.msra.mxu1 %v1651_v41  ;;  %v164_v41 = vrot.slane %v147_v24, %v163_v35 }
  0xb2   :  { %1072 = vmatprep.subr.bf16.mxu0 %v1656_v43  ;;  %1113 = vmatprep.subr.bf16.mxu1 %v1659_v44  ;;  %v160_v44 = vrot.slane %v147_v24, %v159_v42  ;;  %v716_v24 = vrot.slane %v711_v21, %v151_v23  ;;  %v728_v23 = vrot.slane %v711_v21, %v163_v35 }
  0xb5   :  { %1073 = vmatpush1.bf16.msra.mxu0 %v1654_v45  ;;  %1114 = vmatpush1.bf16.msra.mxu1 %v1657_v46 }
  0xb6   :  { %1074 = vmatprep.subr.bf16.mxu0 %v1662_v47  ;;  %1115 = vmatprep.subr.bf16.mxu1 %v1665_v48 }
  0xb9   :  { %1075 = vmatpush1.bf16.msra.mxu0 %v1660_v49  ;;  %1116 = vmatpush1.bf16.msra.mxu1 %v1663_v50 }
  0xba   :  { %1076 = vmatprep.subr.bf16.mxu0 %v1668_v52  ;;  %1117 = vmatprep.subr.bf16.mxu1 %v1671_v53  ;;  %v597_v53 = vld [vmem:[%s2015_s2] sm:$0xff] }
  0xbd   :  { %1077 = vmatpush2.bf16.msra.mxu0 %v1666_v54  ;;  %1118 = vmatpush2.bf16.msra.mxu1 %v1669_v55  ;;  %v612_v54 = vpop.permute.xlu0 %611 }
  0xbe   :  { %1078 = vmatprep.subr.bf16.mxu0 %v1674_v56  ;;  %1119 = vmatprep.subr.bf16.mxu1 %v1677_v57 }
  0xc1   :  { %1079 = vmatpush2.bf16.msra.mxu0 %v1672_v58  ;;  %1120 = vmatpush2.bf16.msra.mxu1 %v1675_v59 }
  0xc2   :  { %1080 = vmatprep.subr.bf16.mxu0 %v1680_v60  ;;  %1121 = vmatprep.subr.bf16.mxu1 %v1683_v61 }
  0xc5   :  { %1081 = vmatpush2.bf16.msra.mxu0 %v1678_v62  ;;  %1122 = vmatpush2.bf16.msra.mxu1 %v1681_v63 }
  0xc6   :  { %1082 = vmatprep.subr.bf16.mxu0 %v1686_v0  ;;  %1123 = vmatprep.subr.bf16.mxu1 %v1689_v1 }
  0xc9   :  { %1083 = vmatpush2.bf16.msra.mxu0 %v1684_v2  ;;  %1124 = vmatpush2.bf16.msra.mxu1 %v1687_v3 }
  0xca   :  { %1084 = vmatprep.subr.bf16.mxu0 %v1692_v4  ;;  %1125 = vmatprep.subr.bf16.mxu1 %v1695_v5 }
  0xcd   :  { %1085 = vmatpush2.bf16.msra.mxu0 %v1690_v6  ;;  %1126 = vmatpush2.bf16.msra.mxu1 %v1693_v7 }
  0xce   :  { %1086 = vmatprep.subr.bf16.mxu0 %v1698_v8  ;;  %1127 = vmatprep.subr.bf16.mxu1 %v1701_v9  ;;  %v1938_v9 = vpop.permute.xlu1 %1177 }
  0xd1   :  { %1087 = vmatpush2.bf16.msra.mxu0 %v1696_v10  ;;  %1128 = vmatpush2.bf16.msra.mxu1 %v1699_v11  ;;  %v1716_v11 = vld [vmem:[%s2020_s7 + $0x38] sm:$0xff]  }
  0xd2   :  { %1088 = vmatprep.subr.bf16.mxu0 %v1704_v13  ;;  %1129 = vmatprep.subr.bf16.mxu1 %v1707_v16  ;;  %v1717_v13 = vld [vmem:[%s2020_s7 + $0x30] sm:$0xff]   ;;  %v1719_v16 = vld [vmem:[%s2020_s7 + $0x20] sm:$0xff]  }
  0xd5   :  { %1089 = vmatpush2.bf16.msra.mxu0 %v1702_v14  ;;  %1130 = vmatpush2.bf16.msra.mxu1 %v1705_v15  ;;  %v1718_v15 = vld [vmem:[%s2020_s7 + $0x28] sm:$0xff]  }
  0xd6   :  { %1090 = vmatprep.subr.bf16.mxu0 %v1710_v17  ;;  %1131 = vmatprep.subr.bf16.mxu1 %v1713_v18  ;;  %v1720_v17 = vld [vmem:[%s2020_s7 + $0x18] sm:$0xff]   ;;  %v1721_v18 = vld [vmem:[%s2020_s7 + $0x10] sm:$0xff]  }
  0xd9   :  { %1091 = vmatpush2.bf16.msra.mxu0 %v1708_v19  ;;  %1132 = vmatpush2.bf16.msra.mxu1 %v1711_v20  ;;  %v1722_v19 = vld [vmem:[%s2020_s7 + $0x8] sm:$0xff]   ;;  %v1723_v20 = vld [vmem:[%s2020_s7] sm:$0xff]  }
  0xda   :  { %1497 = vmatprep.subr.bf16.mxu0 %v1809_v12 }
 0x15c   :  { %v530_v28 = vpop.f32.mrf.mxu0  ;;  %v571_v29 = vpop.f32.mrf.mxu1 }
 0x15d   :  { %v531_v30 = vadd.f32 %v530_v28, %v152_v26  ;;  %v572_v47 = vadd.f32 %v571_v29, %v160_v44  ;;  %v720_v26 = vrot.slane %v711_v21, %v155_v25  ;;  %v724_v25 = vrot.slane %v711_v21, %v159_v42 }
 0x15e   :  { %v532_v31 = vpop.f32.mrf.mxu0  ;;  %v573_v32 = vpop.f32.mrf.mxu1 }
 0x15f   :  { %v1393_v33 = vmul.f32 -1.442695, %v531_v30  ;;  %v533_v34 = vadd.f32 %v532_v31, %v156_v27  ;;  %v574_v43 = vadd.f32 %v573_v32, %v164_v41 }
 0x160   :  { %v534_v36 = vpop.f32.mrf.mxu0  ;;  %v575_v37 = vpop.f32.mrf.mxu1 }
 0x161   :  { %1724 = vpow2.f32 %v1393_v33  ;;  %v1394_v38 = vmul.f32 -1.442695, %v533_v34  ;;  %v1395_v45 = vmul.f32 -1.442695, %v574_v43 }
 0x162   :  { %v535_v39 = vpop.f32.mrf.mxu0  ;;  %v576_v40 = vpop.f32.mrf.mxu1 }
 0x163   :  { %1726 = vpow2.f32 %v1394_v38 }
 0x164   :  { %1728 = vpow2.f32 %v1395_v45 }
 0x16e   :  { %v1725_v46 = vpop.eup %1724 }
 0x16f   :  { %v581_v48 = vadd.f32 1.0, %v1725_v46 }
 0x170   :  { %v1727_v49 = vpop.eup %1726 }
 0x171   :  { %1730 = vrcp.f32 %v581_v48  ;;  %v587_v50 = vadd.f32 1.0, %v1727_v49  ;;  %v1729_v51 = vpop.eup %1728 }
 0x172   :  { %1732 = vtanh.f32 %v572_v47  ;;  %v594_v57 = vadd.f32 1.0, %v1729_v51 }
 0x173   :  { %1734 = vrcp.f32 %v587_v50 }
 0x174   :  { %1736 = vrcp.f32 %v594_v57 }
 0x17e   :  { %v1731_v52 = vpop.eup %1730 }
 0x17f   :  { %v1733_v55 = vpop.eup %1732 }
 0x180   :  { %v1735_v56 = vpop.eup %1734  ;;  %v599_v59 = vmul.f32 %v1733_v55, %v1731_v52 }
 0x181   :  { %v598_v58 = vmul.f32 %v1735_v56, %v597_v53  ;;  %v614_v60 = vmul.f32 %v1735_v56, %v612_v54  ;;  %v1737_v63 = vpop.eup %1736 }
 0x183   :  { %v600_v61 = vadd.f32 %v599_v59, %v598_v58  ;;  %v615_v62 = vadd.f32 %v614_v60, %v599_v59 }
 0x185   :  { %1738 = vtanh.f32 %v600_v61  ;;  %605 = vst.msk [vmem:[%s2024_s11] sm:$0xff] %vm603_vm2, %v600_v61  ;;  %625 = vrot.lane.b32.xlu1 %v615_v62, %s1808_s30 }
 0x186   :  { %1740 = vtanh.f32 %v615_v62 }
 0x192   :  { %v1739_v0 = vpop.eup %1738 }
 0x193   :  { %v1741_v1 = vpop.eup %1740  ;;  %v602_v2 = vmul.f32 %v1739_v0, %v1737_v63 }
 0x194   :  { %v617_v3 = vmul.f32 %v1741_v1, %v1737_v63 }
 0x195   :  { %604 = vst.msk [vmem:[%s2023_s10] sm:$0xff] %vm603_vm2, %v602_v2  ;;  %v606_v4 = vpack.c.bf16 %v602_v2, %v602_v2  ;;  %v1477_v2 = vld [vmem:[%s2021_s8] ss:$0 sm:$0xff] }
 0x196   :  { %619 = vrot.lane.b32.xlu0 %v617_v3, %s1808_s30  ;;  %v630_v5 = vpack.c.bf16 %v617_v3, %v617_v3 }
 0x197   :  { %607 = vst.msk [vmem:[#allocation2] sm:$0xf] %vm69_vm0, %v606_v4 }
 0x198   :  { %631 = vst.msk [vmem:[#allocation2] sm:$0xf] %vm80_vm1, %v630_v5 }
 0x19f   :  { %v646_v6 = vld [vmem:[#allocation2] sm:$0xff] }
 0x1a0   :  { %v1403_v7 = vcombine.high %v646_v6, %v646_v6  ;;  %v1402_v8 = vcombine.low %v646_v6, %v646_v6 }
 0x1a2   :  { %1092 = vmatprep.mubr.bf16.mxu0 %v1403_v7  ;;  %1133 = vmatprep.mubr.bf16.mxu1 %v1403_v7 }
 0x1a3   :  { %1093 = vmatmul.mubr.bf16.vlgmr.msra.gmra.mxu0 %v1402_v8  ;;  %1134 = vmatmul.mubr.bf16.vlgmr.msra.gmra.mxu1 %v1402_v8 }
 0x1a4   :  { %1498 = vmatpush3.bf16.msra.mxu0 %v1716_v11  ;;  %1513 = vmatprep.mubr.msk.bf16.mxu0 %vm1810_vm3, %v1809_v12 }
 0x1a5   :  { %1499 = vmatprep.subr.bf16.mxu0 %v1809_v12 }
 0x1a8   :  { %1500 = vmatpush3.bf16.msra.mxu0 %v1717_v13 }
 0x1a9   :  { %1501 = vmatprep.subr.bf16.mxu0 %v1809_v12 }
 0x1ac   :  { %1502 = vmatpush3.bf16.msra.mxu0 %v1718_v15 }
 0x1ad   :  { %1503 = vmatprep.subr.bf16.mxu0 %v1809_v12 }
 0x1b0   :  { %1504 = vmatpush3.bf16.msra.mxu0 %v1719_v16 }
 0x1b1   :  { %1505 = vmatprep.subr.bf16.mxu0 %v1809_v12 }
 0x1b4   :  { %1506 = vmatpush3.bf16.msra.mxu0 %v1720_v17 }
 0x1b5   :  { %1507 = vmatprep.subr.bf16.mxu0 %v1809_v12 }
 0x1b8   :  { %1508 = vmatpush3.bf16.msra.mxu0 %v1721_v18 }
 0x1b9   :  { %1509 = vmatprep.subr.bf16.mxu0 %v1809_v12 }
 0x1bc   :  { %1510 = vmatpush3.bf16.msra.mxu0 %v1722_v19 }
 0x1bd   :  { %1511 = vmatprep.subr.bf16.mxu0 %v1809_v12 }
 0x1c0   :  { %1512 = vmatpush3.bf16.msra.mxu0 %v1723_v20 }
 0x1f7   :  { %v626_v10 = vpop.permute.xlu1 %625 }
 0x1f8   :  { %1398 = vst.msk [vmem:[%s2024_s11 + $0x8] sm:$0xff] %vm603_vm2, %v626_v10 }
 0x1ff   :  { %v1471_v35 = vld [vmem:[%s2015_s2 + $0x10] sm:$0xff] }
 0x208   :  { %v620_v14 = vpop.permute.xlu0 %619 }
 0x209   :  { %1397 = vst.msk [vmem:[%s2023_s10 + $0x8] sm:$0xff] %vm603_vm2, %v620_v14 }
 0x263   :  { %v1094_v27 = vpop.f32.mrf.mxu0  ;;  %v1135_v28 = vpop.f32.mrf.mxu1 }
 0x264   :  { %v1095_v29 = vadd.f32 %v1094_v27, %v716_v24  ;;  %v1136_v44 = vadd.f32 %v1135_v28, %v724_v25 }
 0x265   :  { %v1096_v30 = vpop.f32.mrf.mxu0  ;;  %v1137_v31 = vpop.f32.mrf.mxu1 }
 0x266   :  { %v1468_v32 = vmul.f32 -1.442695, %v1095_v29  ;;  %v1097_v33 = vadd.f32 %v1096_v30, %v720_v26  ;;  %v1138_v40 = vadd.f32 %v1137_v31, %v728_v23 }
 0x267   :  { %v1098_v34 = vpop.f32.mrf.mxu0  ;;  %v1139_v36 = vpop.f32.mrf.mxu1 }
 0x268   :  { %1742 = vpow2.f32 %v1468_v32  ;;  %v1469_v37 = vmul.f32 -1.442695, %v1097_v33  ;;  %v1470_v41 = vmul.f32 -1.442695, %v1138_v40 }
 0x269   :  { %v1099_v38 = vpop.f32.mrf.mxu0  ;;  %v1140_v39 = vpop.f32.mrf.mxu1 }
 0x26a   :  { %1744 = vpow2.f32 %v1469_v37 }
 0x26b   :  { %1746 = vpow2.f32 %v1470_v41 }
 0x275   :  { %v1743_v43 = vpop.eup %1742 }
 0x276   :  { %v1145_v45 = vadd.f32 1.0, %v1743_v43 }
 0x277   :  { %v1745_v46 = vpop.eup %1744 }
 0x278   :  { %1748 = vrcp.f32 %v1145_v45  ;;  %v1151_v47 = vadd.f32 1.0, %v1745_v46  ;;  %v1747_v48 = vpop.eup %1746 }
 0x279   :  { %1750 = vtanh.f32 %v1136_v44  ;;  %v1158_v22 = vadd.f32 1.0, %v1747_v48 }
 0x27a   :  { %1752 = vrcp.f32 %v1151_v47 }
 0x27b   :  { %1754 = vrcp.f32 %v1158_v22 }
 0x285   :  { %v1749_v49 = vpop.eup %1748 }
 0x286   :  { %v1751_v50 = vpop.eup %1750 }
 0x287   :  { %v1753_v51 = vpop.eup %1752  ;;  %v1164_v52 = vmul.f32 %v1751_v50, %v1749_v49 }
 0x288   :  { %v1163_v42 = vmul.f32 %v1753_v51, %v1471_v35  ;;  %v1180_v53 = vmul.f32 %v1753_v51, %v1938_v9  ;;  %v1755_v56 = vpop.eup %1754 }
 0x28a   :  { %v1181_v54 = vadd.f32 %v1180_v53, %v1164_v52  ;;  %v1165_v55 = vadd.f32 %v1164_v52, %v1163_v42 }
 0x28c   :  { %1191 = vrot.lane.b32.xlu1 %v1181_v54, %s1808_s30  ;;  %1756 = vtanh.f32 %v1165_v55  ;;  %1473 = vst.msk [vmem:[%s2024_s11 + $0x10] sm:$0xff] %vm603_vm2, %v1165_v55 }
 0x28d   :  { %1758 = vtanh.f32 %v1181_v54 }
 0x299   :  { %v1757_v57 = vpop.eup %1756 }
 0x29a   :  { %v1759_v58 = vpop.eup %1758  ;;  %v1167_v59 = vmul.f32 %v1757_v57, %v1755_v56 }
 0x29b   :  { %v1183_v60 = vmul.f32 %v1759_v58, %v1755_v56 }
 0x29c   :  { %1472 = vst.msk [vmem:[%s2023_s10 + $0x10] sm:$0xff] %vm603_vm2, %v1167_v59  ;;  %v1172_v61 = vpack.c.bf16 %v1167_v59, %v1167_v59 }
 0x29d   :  { %1185 = vrot.lane.b32.xlu0 %v1183_v60, %s1808_s30  ;;  %v1196_v62 = vpack.c.bf16 %v1183_v60, %v1183_v60 }
 0x29e   :  { %1173 = vst.msk [vmem:[#allocation2] sm:$0xf] %vm69_vm0, %v1172_v61 }
 0x29f   :  { %1197 = vst.msk [vmem:[#allocation2] sm:$0xf] %vm80_vm1, %v1196_v62 }
 0x2a6   :  { %v1198_v63 = vld [vmem:[#allocation2] sm:$0xf] }
 0x2a7   :  { %1514 = vmatmul.mubr.bf16.vlgmr.msra.gmra.mxu0 %v1198_v63 }
 0x2fe   :  { %v1192_v0 = vpop.permute.xlu1 %1191 }
 0x2ff   :  { %1476 = vst.msk [vmem:[%s2024_s11 + $0x18] sm:$0xff] %vm603_vm2, %v1192_v0 }
 0x30f   :  { %v1186_v1 = vpop.permute.xlu0 %1185 }
 0x310   :  { %1475 = vst.msk [vmem:[%s2023_s10 + $0x18] sm:$0xff] %vm603_vm2, %v1186_v1 }
 0x367   :  { %v1304_v3 = vpop.f32.mrf.mxu0 }
 0x368   :  { %v1305_v4 = vadd.f32 %v1477_v2, %v1304_v3 }
 0x369   :  { %v1515_v5 = vpop.f32.mrf.mxu0 }
 0x36a   :  { %1310 = vst [vmem:[%s2022_s9] sm:$0xff] %v1305_v4 }
 0x36b   :  { %v1307_v6 = vpop.f32.mrf.mxu0 }
 0x36d   :  { %v1516_v7 = vpop.f32.mrf.mxu0 }
 0x36e   :  { %1323 = vsyncpa [#allocation4], 1 }
 0x36f   :  { %1324 = vsyncpa [#allocation6], 1 }

</bundles_post_ra>
